<compile_context>
chip_gen: v6e
topology: v6e:2x2x1
jax: 0.10.0
libtpu: 0.0.40
codegen_flags: <defaults>
</compile_context>

<pallas_src>
import jax
import jax.numpy as jnp
from jax.experimental import pallas as pl
from jax.experimental.pallas import tpu as pltpu


def regressor_kernel(x_ref, w1_ref, b1_ref, w2_ref, b2_ref, o_ref):
    # x_ref:  (TB, 256)  w1_ref: (256, 128) [f32 or bf16]  b1_ref: (1, 128)
    # w2_ref: (128, 3)   b2_ref: (1, 3)                    o_ref:  (TB, 3)
    x = x_ref[...]

    # fc1 + ReLU. x is cast in vregs to match w1's dtype (no extra HBM
    # traffic); MXU accumulates in f32, bias/ReLU stay f32 on the VPU.
    h = jnp.dot(x.astype(w1_ref.dtype), w1_ref[...],
                preferred_element_type=jnp.float32)
    h = jnp.maximum(h + b1_ref[...], 0.0)

    # fc2 + sigmoid (tiny N=3 matmul; epilogue, not the bottleneck).
    y = jnp.dot(h, w2_ref[...], preferred_element_type=jnp.float32)
    y = jax.nn.sigmoid(y + b2_ref[...])

    o_ref[...] = y.astype(o_ref.dtype)


def regressor_forward(x, w1, b1, w2, b2, *, block_b=4096, fc1_bf16=True):
    """x: (B, 256) -> (B, 3) f32.

    block_b : batch tile size (amortizes per-grid-step overhead; default 4096
              keeps the working set ~14 MiB, safe on v5e/v6e/v7x).
    fc1_bf16: run the fc1 matmul in bf16 (f32 accumulate, f32 epilogue). The
              cast of x happens inside the kernel, so HBM traffic on the
              dominant x stream is unchanged; only the tiny w1 is cast here.
              Small, documented numerical deviation (~1e-3 on the outputs).
    """
    B = x.shape[0]
    assert x.shape[1] == 256, "Regressor expects 256 input features"

    x = x.astype(jnp.float32)
    w1 = w1.astype(jnp.bfloat16 if fc1_bf16 else jnp.float32)
    b1 = b1.astype(jnp.float32)
    w2 = w2.astype(jnp.float32)
    b2 = b2.astype(jnp.float32)

    # Batch tile. No wrapper-side padding: Pallas masks the partial last
    # block (rows are independent, OOB tail rows are discarded on the masked
    # writeback, so valid rows are unaffected).
    if block_b >= B:
        tb = B                                   # single tile == full array dim
    else:
        tb = max(8, (min(block_b, B) // 8) * 8)  # multiple of 8 sublanes
    n_tiles = pl.cdiv(B, tb)

    out = pl.pallas_call(
        regressor_kernel,
        out_shape=jax.ShapeDtypeStruct((B, 3), jnp.float32),
        grid=(n_tiles,),
        in_specs=[
            # x tile walks the batch axis (double-buffered by the pipeline).
            pl.BlockSpec((tb, 256), lambda i: (i, 0)),
            # Weights / biases: constant index_map -> stay VMEM-resident.
            pl.BlockSpec((256, 128), lambda i: (0, 0)),
            pl.BlockSpec((1, 128), lambda i: (0, 0)),
            pl.BlockSpec((128, 3), lambda i: (0, 0)),
            pl.BlockSpec((1, 3), lambda i: (0, 0)),
        ],
        out_specs=pl.BlockSpec((tb, 3), lambda i: (i, 0)),
        compiler_params=pltpu.CompilerParams(
            # Independent batch tiles -> megacore-shardable on v7x.
            dimension_semantics=("parallel",),
            # TB=4096 f32: 8 MiB x (x2 buf) + 4 MiB lane-padded out (x2 buf)
            # + ~0.13 MiB weights + ~2 MiB temps ~= 14 MiB; 40 MiB gives
            # headroom up to TB~8192 while respecting v7x's 64 MiB VMEM.
            vmem_limit_bytes=40 * 1024 * 1024,
        ),
    )(x, w1, b1, w2, b2)

    return out


def init_params(key):
    """Deterministic parameter init (PyTorch-like uniform fan-in init)."""
    k1, k2, k3, k4 = jax.random.split(key, 4)
    bound1 = 1.0 / jnp.sqrt(256.0)
    bound2 = 1.0 / jnp.sqrt(128.0)
    # stored as (in, out) = transpose of PyTorch's (out, in)
    w1 = jax.random.uniform(k1, (256, 128), jnp.float32, -bound1, bound1)
    b1 = jax.random.uniform(k2, (1, 128), jnp.float32, -bound1, bound1)
    w2 = jax.random.uniform(k3, (128, 3), jnp.float32, -bound2, bound2)
    b2 = jax.random.uniform(k4, (1, 3), jnp.float32, -bound2, bound2)
    return w1, b1, w2, b2


def _reference(x, w1, b1, w2, b2):
    return jax.nn.sigmoid(jnp.maximum(x @ w1 + b1, 0.0) @ w2 + b2)


if __name__ == "__main__":
    key = jax.random.PRNGKey(0)
    kx, kp = jax.random.split(key)
    w1, b1, w2, b2 = init_params(kp)

    # Case 1: B not a multiple of the tile -> multi-tile grid with a masked
    # partial last block (no wrapper padding), exact f32 fc1.
    B1 = 300
    x1 = jax.random.normal(kx, (B1, 256), jnp.float32)
    out1 = jax.block_until_ready(
        regressor_forward(x1, w1, b1, w2, b2, block_b=128, fc1_bf16=False))
    ref1 = _reference(x1, w1, b1, w2, b2)
    assert out1.shape == (B1, 3)
    assert jnp.allclose(out1, ref1, atol=1e-5, rtol=1e-5)

    # Case 2: tiny latency-bound batch (single tile, tb == B == 8).
    B2 = 8
    x2 = jax.random.normal(jax.random.fold_in(kx, 1), (B2, 256), jnp.float32)
    out2 = jax.block_until_ready(
        regressor_forward(x2, w1, b1, w2, b2, fc1_bf16=False))
    ref2 = _reference(x2, w1, b1, w2, b2)
    assert out2.shape == (B2, 3)
    assert jnp.allclose(out2, ref2, atol=1e-5, rtol=1e-5)

    # Case 3: default config (block_b=4096 -> single full-array tile here,
    # tb == B == 300, and in-kernel bf16 fc1 matmul).
    B3 = 300
    x3 = jax.random.normal(jax.random.fold_in(kx, 2), (B3, 256), jnp.float32)
    out3 = jax.block_until_ready(regressor_forward(x3, w1, b1, w2, b2))
    ref3 = _reference(x3, w1, b1, w2, b2)
    assert out3.shape == (B3, 3)
    assert jnp.allclose(out3, ref3, atol=2e-2, rtol=2e-2)

    print("KERNEL_OK")
</pallas_src>

<mosaic_0001>
module attributes {stable_mosaic.version = 11 : i64} {
  func.func @regressor_kernel(%arg0: i32, %arg1: memref<128x256xf32, #tpu.memory_space<vmem>>, %arg2: memref<256x128xf32, #tpu.memory_space<vmem>>, %arg3: memref<1x128xf32, #tpu.memory_space<vmem>>, %arg4: memref<128x3xf32, #tpu.memory_space<vmem>>, %arg5: memref<1x3xf32, #tpu.memory_space<vmem>>, %arg6: memref<128x3xf32, #tpu.memory_space<vmem>>) attributes {dimension_semantics = [#tpu.dimension_semantics<parallel>], iteration_bounds = array<i64: 3>, scalar_prefetch = 0 : i64, scratch_operands = 0 : i64, tpu.core_type = #tpu.core_type<tc>, window_params = [{transform_indices = @transform_0, window_bounds = array<i64: 128, 256>}, {pipeline_mode = #tpu.pipeline_mode<synchronous>, transform_indices = @transform_1, window_bounds = array<i64: 256, 128>}, {pipeline_mode = #tpu.pipeline_mode<synchronous>, transform_indices = @transform_2, window_bounds = array<i64: 1, 128>}, {pipeline_mode = #tpu.pipeline_mode<synchronous>, transform_indices = @transform_3, window_bounds = array<i64: 128, 3>}, {pipeline_mode = #tpu.pipeline_mode<synchronous>, transform_indices = @transform_4, window_bounds = array<i64: 1, 3>}, {transform_indices = @transform_5, window_bounds = array<i64: 128, 3>}]} {
    %c0 = arith.constant 0 : index
    %c0_0 = arith.constant 0 : index
    %0 = vector.load %arg1[%c0, %c0_0] : memref<128x256xf32, #tpu.memory_space<vmem>>, vector<128x256xf32>
    %c0_1 = arith.constant 0 : index
    %c0_2 = arith.constant 0 : index
    %1 = vector.load %arg2[%c0_1, %c0_2] : memref<256x128xf32, #tpu.memory_space<vmem>>, vector<256x128xf32>
    %cst = arith.constant dense<0.000000e+00> : vector<128x128xf32>
    %2 = tpu.matmul %0, %1, %cst {dimension_numbers = #tpu.dot_dimension_numbers<[1], [0], [0], [1], [0, 0, 1, 1], [], []>} : vector<128x256xf32>, vector<256x128xf32>, vector<128x128xf32> -> vector<128x128xf32>
    %c0_3 = arith.constant 0 : index
    %c0_4 = arith.constant 0 : index
    %3 = vector.load %arg3[%c0_3, %c0_4] : memref<1x128xf32, #tpu.memory_space<vmem>>, vector<1x128xf32>
    %4 = vector.broadcast %3 : vector<1x128xf32> to vector<128x128xf32>
    %5 = arith.addf %2, %4 : vector<128x128xf32>
    %cst_5 = arith.constant 0.000000e+00 : f32
    %6 = vector.broadcast %cst_5 : f32 to vector<128x128xf32>
    %7 = arith.maximumf %5, %6 : vector<128x128xf32>
    %c0_6 = arith.constant 0 : index
    %c0_7 = arith.constant 0 : index
    %8 = vector.load %arg4[%c0_6, %c0_7] : memref<128x3xf32, #tpu.memory_space<vmem>>, vector<128x3xf32>
    %cst_8 = arith.constant dense<0.000000e+00> : vector<128x3xf32>
    %9 = tpu.matmul %7, %8, %cst_8 {dimension_numbers = #tpu.dot_dimension_numbers<[1], [0], [0], [1], [0, 0, 1, 1], [], []>} : vector<128x128xf32>, vector<128x3xf32>, vector<128x3xf32> -> vector<128x3xf32>
    %c0_9 = arith.constant 0 : index
    %c0_10 = arith.constant 0 : index
    %10 = vector.load %arg5[%c0_9, %c0_10] : memref<1x3xf32, #tpu.memory_space<vmem>>, vector<1x3xf32>
    %11 = vector.broadcast %10 : vector<1x3xf32> to vector<128x3xf32>
    %12 = arith.addf %9, %11 : vector<128x3xf32>
    %13 = arith.negf %12 : vector<128x3xf32>
    %14 = math.exp %13 : vector<128x3xf32>
    %cst_11 = arith.constant 1.000000e+00 : f32
    %15 = vector.broadcast %cst_11 : f32 to vector<128x3xf32>
    %16 = arith.addf %15, %14 : vector<128x3xf32>
    %17 = arith.divf %15, %16 : vector<128x3xf32>
    %c0_12 = arith.constant 0 : index
    %c0_13 = arith.constant 0 : index
    %18 = vector.load %arg6[%c0_12, %c0_13] : memref<128x3xf32, #tpu.memory_space<vmem>>, vector<128x3xf32>
    tpu.vector_store %arg6[%c0_12, %c0_13], %17 {strides = array<i32>} : memref<128x3xf32, #tpu.memory_space<vmem>>, vector<128x3xf32>,
    return
  }
  func.func @transform_0(%arg0: i32) -> (i32, i32) {
    %c0_i32 = arith.constant 0 : i32
    %c0_i32_0 = arith.constant 0 : i32
    return %arg0, %c0_i32 : i32, i32
  }
  func.func @transform_1(%arg0: i32) -> (i32, i32) {
    %c0_i32 = arith.constant 0 : i32
    %c0_i32_0 = arith.constant 0 : i32
    %c0_i32_1 = arith.constant 0 : i32
    return %c0_i32, %c0_i32_0 : i32, i32
  }
  func.func @transform_2(%arg0: i32) -> (i32, i32) {
    %c0_i32 = arith.constant 0 : i32
    %c0_i32_0 = arith.constant 0 : i32
    %c0_i32_1 = arith.constant 0 : i32
    return %c0_i32, %c0_i32_0 : i32, i32
  }
  func.func @transform_3(%arg0: i32) -> (i32, i32) {
    %c0_i32 = arith.constant 0 : i32
    %c0_i32_0 = arith.constant 0 : i32
    %c0_i32_1 = arith.constant 0 : i32
    return %c0_i32, %c0_i32_0 : i32, i32
  }
  func.func @transform_4(%arg0: i32) -> (i32, i32) {
    %c0_i32 = arith.constant 0 : i32
    %c0_i32_0 = arith.constant 0 : i32
    %c0_i32_1 = arith.constant 0 : i32
    return %c0_i32, %c0_i32_0 : i32, i32
  }
  func.func @transform_5(%arg0: i32) -> (i32, i32) {
    %c0_i32 = arith.constant 0 : i32
    %c0_i32_0 = arith.constant 0 : i32
    return %arg0, %c0_i32 : i32, i32
  }
}

</mosaic_0001>

<bundles_post_ra>
// kernel: tpu_custom_call.1
= control target key start
LH: loop header
LB: loop body
LE: loop exit
PB: predicated region body
PF: predicated region fallthrough
CT: control target
= control target key end

     0   :  { %10 = vsyncpa [#allocation3], 0  ;;  %s2061_s0 = inlined_call_operand.hbm [shape: f32[300,256], index: 0, kind: input, shape index: {}]   ;;  %s2062_s1 = inlined_call_operand.hbm [shape: f32[256,128], index: 1, kind: input, shape index: {}]   ;;  %s2063_s2 = inlined_call_operand.vmem [shape: f32[1,128], index: 2, kind: input, shape index: {}]   ;;  %s2064_s3 = inlined_call_operand.vmem [shape: f32[128,3], index: 3, kind: input, shape index: {}]   ;;  %s2065_s4 = inlined_call_operand.vmem [shape: f32[1,3], index: 4, kind: input, shape index: {}]   ;;  %s2066_s5 = inlined_call_operand.vmem [shape: f32[300,3], index: 5, kind: output, shape index: {}]  }
   0x1   :  { %12 = vsyncpa [#allocation3 + $0x1], 0 }
   0x2   :  { %13 = vsyncpa [#allocation5], 0  ;;  %s1677_s18 = smov 0   ;;  %s1679_s19 = smov 0  }
   0x3   :  { %s1681_s20 = smov 0   ;;  %s1683_s21 = smov 0  }
   0x4 LB: > { %s1696_s22 = sadd.s32 4294967295, %s1607_s21   ;;  %s1699_s23 = sadd.s32 1, %s1607_s21   ;;  %s1607_s21 = sphi %s1683_s21, %s2080_s21   ;;  %s1603_s20 = sphi %s1681_s20, %s2079_s20   ;;  %s1599_s19 = sphi %s1679_s19, %s2078_s19   ;;  %s1595_s18 = sphi %s1677_s18, %s2077_s18  }
   0x5   : > { %s23_s24 = ssub.s32 %s1607_s21, %s1699_s23  ;;  %s26_s25 = sadd.s32 1, %s1603_s20 }
   0x6   : > { %p24_p0 = scmp.eq.s32.totalorder %s23_s24, 0  ;;  %p33_p1 = scmp.ne.s32.totalorder %s1603_s20, %s1599_s19 }
   0x7   : > { %p34_p2 = scmp.eq.s32.totalorder %s1607_s21, 0  ;;  %p39_p3 = scmp.ne.s32.totalorder %s1599_s19, %s1595_s18 }
   0x8   : > { %s1709_s26 = scalar_select %p24_p0, %s1603_s20, %s26_s25  }
   0x9   : > { %p1711_p4 = por %p34_p2, %p33_p1  ;;  %p40_p5 = scmp.eq.s32.totalorder %s1696_s22, 0 }
   0xa   : > { %p147_p6 = scmp.eq.s32.totalorder %s1696_s22, 2  ;;  %p1084_p7 = scmp.ge.s32.totalorder %s1607_s21, 1 }
   0xb   : > { %p1720_p8 = por %p40_p5, %p39_p3  ;;  %p160_p9 = scmp.lt.s32.totalorder %s1607_s21, 4 }
   0xc   : > { %p1725_p10 = por %p147_p6, %p33_p1  ;;  %s1641_s6 = smov [#allocation4]  }
   0xd   : > { %s2069_s28 = scalar_select %p1720_p8, 1, 0 }
   0xe   : > { %s2070_s29 = scalar_select %p1725_p10, 1, 0 }
   0xf   : > { %p1729_p11 = pnand %p1084_p7, %p160_p9  ;;  %s172_s7 = sshll.u32 %s1641_s6, 4  ;;  %s173_s7 = int_to_ptr.vmem [resolvable:$true] %s172_s7 }
  0x10   : > { %s1496_s8 = scalar_lea.vmem %s173_s7, 4096  ;;  %p1504_p6 = scmp.lt.s32.totalorder %s173_s7, %s173_s7 }
  0x11   : > { %p1314_p12 = pneg %p1729_p11  ;;  %p1497_p2 = scmp.ne.s32.totalorder %s173_s7, %s1496_s8 }
  0x12   : > { %p1505_p8 = scmp.lt.s32.totalorder %s1496_s8, %s1496_s8 }
  0x13   : > { %p1315_p13 = pnand %p1314_p12, %p40_p5 }
  0x14   : > { %p1506_p10 = por %p1505_p8, %p1504_p6 }
  0x15   : > { %p1487_p0 = pneg %p1315_p13 }
  0x17   : > { %p1499_p3 = pnand %p1497_p2, %p1487_p0 }
  0x19   : > { %p1500_p1 = pneg %p1499_p3 }
  0x1b   : > { %p1507_p7 = pnand %p1506_p10, %p1500_p1 }
  0x1d   : > { %1510 = shalt.err (!%p1507_p7)
}
  0x1e   : > { %s1642_s9 = smov 128   ;;  %s1643_s10 = smov 8  }
  0x1f   : > { %1317 = dma.hbm_to_vmem [thread:$0]  (!%p1315_p13), %s2062_s1, 4096, %s173_s7, [#allocation5], %s1642_s9, %s1642_s9, %s1643_s10  }
  0x20   : > { %p1086_p9 = scmp.ge.s32.totalorder %s1607_s21, 3 }
  0x22   : > { %191 = sbr.rel (%p1086_p9) target bundleno = 71 (0x47), region = 32 }
  0x27   : > { %194 = sbr.rel (!%p1711_p4) target bundleno = 71 (0x47), region = 36  ;;  %s195_s13 = sand.u32 (%p1711_p4), 1, %s1603_s20  }
  0x28   : > { %s1088_s14 = sshll.u32 (%p1711_p4), %s1607_s21, 4  ;;  %s1087_s15 = sshll.u32 (%p1711_p4), %s195_s13, 8 }
  0x29   : > { %s201_s16 = ssub.s32 (%p1711_p4), 38, %s1088_s14  ;;  %s1748_s24 = scalar_lea.sflag (%p1711_p4), [#allocation3], %s195_s13 }
  0x2a   : > { %p202_p8 = scmp.lt.s32.totalorder (%p1711_p4), %s201_s16, 16  ;;  %s199_s25 = scalar_lea.vmem (%p1711_p4), [#allocation2], %s1087_s15 }
  0x2c   : > { %s2082_s16 = smov (!%p202_p8, %s201_s16), 16 }
  0x2d   : > { %s1745_s17 = sshll.u32 %s2082_s16, 8 }
  0x2e   : > { %s207_s18 = ssub.s32 4096, %s1745_s17 }
  0x2f   : > { %208 = vsyncadd %s1748_s24, %s207_s18  ;;  %p1091_p4 = scmp.ne.s32.totalorder %s1745_s17, 0  ;;  %s1137_s27 = sshll.u32 %s1607_s21, 12 }
  0x30   : > { %s1756_s8 = scalar_lea.hbm %s2061_s0, %s1137_s27  ;;  %s214_s9 = sshll.u32 %s199_s25, 4  ;;  %s1758_s9 = int_to_ptr.vmem [resolvable:$true] %s214_s9 }
  0x31   : > { %s1511_s10 = scalar_lea.hbm %s1756_s8, %s1745_s17  ;;  %s1515_s21 = scalar_lea.hbm %s2061_s0, 9728 }
  0x32   : > { %p1512_p10 = scmp.ne.s32.totalorder %s1756_s8, %s1511_s10  ;;  %p1516_p0 = scmp.lt.s32.totalorder %s1756_s8, %s2061_s0 }
  0x33   : > { %p1517_p2 = scmp.lt.s32.totalorder %s1515_s21, %s1511_s10 }
  0x34   : > { %p1513_p12 = pnand %p1512_p10, %p1091_p4 }
  0x35   : > { %p1518_p3 = por %p1517_p2, %p1516_p0 }
  0x36   : > { %p1514_p13 = pneg %p1513_p12 }
  0x38   : > { %p1519_p1 = pnand %p1518_p3, %p1514_p13 }
  0x3a   : > { %1522 = shalt.err (!%p1519_p1)
}
  0x3b   : > { %s1523_s15 = scalar_lea.vmem %s1758_s9, %s1745_s17  ;;  %s1644_s16 = smov [#allocation2]  }
  0x3c   : > { %p1524_p6 = scmp.ne.s32.totalorder %s1758_s9, %s1523_s15  ;;  %s1527_s18 = sshll.u32 %s1644_s16, 4  ;;  %s1528_s18 = int_to_ptr.vmem [resolvable:$false] %s1527_s18 }
  0x3d   : > { %s1529_s25 = scalar_lea.vmem %s1528_s18, 8192  ;;  %p1530_p8 = scmp.lt.s32.totalorder %s1758_s9, %s1528_s18 }
  0x3e   : > { %p1525_p7 = pnand %p1524_p6, %p1091_p4  ;;  %p1531_p10 = scmp.lt.s32.totalorder %s1529_s25, %s1523_s15 }
  0x40   : > { %p1526_p9 = pneg %p1525_p7  ;;  %p1532_p12 = por %p1531_p10, %p1530_p8 }
  0x42   : > { %p1533_p0 = pnand %p1532_p12, %p1526_p9 }
  0x44   : > { %1536 = shalt.err (!%p1533_p0)
}
  0x45   : > { %s1645_s27 = smov 256   ;;  %s1646_s6 = smov 16  }
  0x46   : > { %220 = dma.hbm_to_vmem [thread:$0]  (%p1091_p4), %s1756_s8, %s1745_s17, %s1758_s9, %s1748_s24, %s1645_s27, %s1645_s27, %s1646_s6  }
  0x47 PF: > { %226 = sbr.rel (%p1729_p11) target bundleno = 645 (0x285), region = 40  ;;  %s1787_s7 = sand.u32 (!%p1729_p11), 1, %s1599_s19  }
  0x48   : > { %s1097_s10 = sshll.u32 (!%p1729_p11), %s1787_s7, 8  ;;  %s229_s11 = scalar_lea.sflag (!%p1729_p11), [#allocation3], %s1787_s7 }
  0x49   : > { %s1791_s12 = scalar_lea.vmem (!%p1729_p11), [#allocation2], %s1097_s10  ;;  %p2072_p13 = scmp.ne.s32.totalorder (!%p1729_p11), %s2069_s28, 0 }
  0x4c   : > { %1586 = dma.done.wait (%p2072_p13), %s229_s11, 4096  }
  0x4d   : > { %1588 = vsyncadd (%p2072_p13), %s229_s11, 4294963200 }
  0x4e   : > { %1590 = dma.done.wait (%p40_p5), [#allocation5], 4096  }
  0x4f   : > { %1592 = vsyncadd (%p40_p5), [#allocation5], 4294963200  ;;  %v336_v0 = vld [vmem:[#allocation4 + $0xf8] sm:$0xff]  ;;  %v335_v2 = vld [vmem:[#allocation4 + $0xf0] sm:$0xff]  ;;  %s1099_s30 = sshll.u32 %s1787_s7, 7  ;;  %vm769_vm0 = vcmask 23552  }
  0x50   : > { %v320_v1 = vld [vmem:[#allocation4 + $0x78] sm:$0xff]  ;;  %1141 = vmatprep.subr.mxu0 %v336_v0  ;;  %v319_v3 = vld [vmem:[#allocation4 + $0x70] sm:$0xff]  ;;  %v334_v4 = vld [vmem:[#allocation4 + $0xe8] sm:$0xff]  ;;  %s1917_s17 = scalar_lea.vmem [#allocation6], %s1099_s30   ;;  %p2073_p5 = scmp.ne.s32.totalorder %s2070_s29, 0 }
  0x51   : > { %1142 = vmatpush3.msra.mxu0 %v320_v1  ;;  %v318_v5 = vld [vmem:[#allocation4 + $0x68] sm:$0xff]  ;;  %v333_v6 = vld [vmem:[#allocation4 + $0xe0] sm:$0xff]  ;;  %v332_v8 = vld [vmem:[#allocation4 + $0xd8] sm:$0xff]  ;;  %s1119_s7 = sshll.u32 (%p2073_p5), %s1696_s22, 4  ;;  %s1138_s24 = sshll.u32 (%p2073_p5), %s1696_s22, 7 }
  0x52   : > { %1143 = vmatprep.subr.mxu0 %v335_v2  ;;  %v317_v7 = vld [vmem:[#allocation4 + $0x60] sm:$0xff]  ;;  %v316_v9 = vld [vmem:[#allocation4 + $0x58] sm:$0xff]  ;;  %v331_v10 = vld [vmem:[#allocation4 + $0xd0] sm:$0xff]  ;;  %s794_s8 = ssub.s32 (%p2073_p5), 38, %s1119_s7  ;;  %s1965_s13 = scalar_lea.vmem (%p2073_p5), %s2066_s5, %s1138_s24  }
  0x53   : > { %1144 = vmatpush3.msra.mxu0 %v319_v3  ;;  %v315_v11 = vld [vmem:[#allocation4 + $0x50] sm:$0xff]  ;;  %v330_v12 = vld [vmem:[#allocation4 + $0xc8] sm:$0xff]  ;;  %v329_v15 = vld [vmem:[#allocation4 + $0xc0] sm:$0xff]  ;;  %p795_p11 = scmp.lt.s32.totalorder (%p2073_p5), %s794_s8, 16 }
  0x54   : > { %1145 = vmatprep.subr.mxu0 %v334_v4  ;;  %v274_v13 = vld [vmem:[%s1791_s12 + $0x8] sm:$0xff]  ;;  %v313_v16 = vld [vmem:[#allocation4 + $0x40] sm:$0xff]  ;;  %v328_v17 = vld [vmem:[#allocation4 + $0xb8] sm:$0xff] }
  0x55   : > { %1146 = vmatpush3.msra.mxu0 %v318_v5  ;;  %v314_v14 = vld [vmem:[#allocation4 + $0x48] sm:$0xff]  ;;  %408 = vmatprep.mubr.f32.mxu0 %v274_v13  ;;  %v312_v18 = vld [vmem:[#allocation4 + $0x38] sm:$0xff]  ;;  %v327_v19 = vld [vmem:[#allocation4 + $0xb0] sm:$0xff] }
  0x56   : > { %1147 = vmatprep.subr.mxu0 %v333_v6  ;;  %v311_v20 = vld [vmem:[#allocation4 + $0x30] sm:$0xff]  ;;  %v326_v21 = vld [vmem:[#allocation4 + $0xa8] sm:$0xff]  ;;  %v325_v23 = vld [vmem:[#allocation4 + $0xa0] sm:$0xff] }
  0x57   : > { %1148 = vmatpush3.msra.mxu0 %v317_v7  ;;  %v310_v22 = vld [vmem:[#allocation4 + $0x28] sm:$0xff]  ;;  %v309_v24 = vld [vmem:[#allocation4 + $0x20] sm:$0xff]  ;;  %v520_v25 = vld [vmem:[%s2064_s3 + $0x78] sm:$0xff] }
  0x58   : > { %1149 = vmatprep.subr.mxu0 %v332_v8  ;;  %v519_v26 = vld [vmem:[%s2064_s3 + $0x70] sm:$0xff]  ;;  %v324_v27 = vld [vmem:[#allocation4 + $0x98] sm:$0xff]  ;;  %1253 = vmatprep.subr.mxu1 %v520_v25  ;;  %v518_v29 = vld [vmem:[%s2064_s3 + $0x68] sm:$0xff] }
  0x59   : > { %1150 = vmatpush3.msra.mxu0 %v316_v9  ;;  %v308_v28 = vld [vmem:[#allocation4 + $0x18] sm:$0xff]  ;;  %1254 = vmatpush3.msra.mxu1 %v520_v25  ;;  %v323_v30 = vld [vmem:[#allocation4 + $0x90] sm:$0xff]  ;;  %v517_v32 = vld [vmem:[%s2064_s3 + $0x60] sm:$0xff] }
  0x5a   : > { %1151 = vmatprep.subr.mxu0 %v331_v10  ;;  %1255 = vmatprep.subr.mxu1 %v519_v26  ;;  %v307_v31 = vld [vmem:[#allocation4 + $0x10] sm:$0xff]  ;;  %v322_v33 = vld [vmem:[#allocation4 + $0x88] sm:$0xff]  ;;  %v516_v35 = vld [vmem:[%s2064_s3 + $0x58] sm:$0xff] }
  0x5b   : > { %1152 = vmatpush3.msra.mxu0 %v315_v11  ;;  %1256 = vmatpush3.msra.mxu1 %v519_v26  ;;  %v306_v34 = vld [vmem:[#allocation4 + $0x8] sm:$0xff]  ;;  %v321_v36 = vld [vmem:[#allocation4 + $0x80] sm:$0xff]  ;;  %v515_v38 = vld [vmem:[%s2064_s3 + $0x50] sm:$0xff] }
  0x5c   : > { %1153 = vmatprep.subr.mxu0 %v330_v12  ;;  %1257 = vmatprep.subr.mxu1 %v518_v29  ;;  %v305_v37 = vld [vmem:[#allocation4] sm:$0xff]  ;;  %v276_v40 = vld [vmem:[%s1791_s12 + $0x18] sm:$0xff]  ;;  %v514_v41 = vld [vmem:[%s2064_s3 + $0x48] sm:$0xff] }
  0x5d   : > { %1154 = vmatpush3.msra.mxu0 %v314_v14  ;;  %1258 = vmatpush3.msra.mxu1 %v518_v29  ;;  %v273_v39 = vld [vmem:[%s1791_s12] sm:$0xff]  ;;  %v275_v43 = vld [vmem:[%s1791_s12 + $0x10] sm:$0xff]  ;;  %v278_v44 = vld [vmem:[%s1791_s12 + $0x28] sm:$0xff] }
  0x5e   : > { %1155 = vmatprep.subr.mxu0 %v329_v15  ;;  %1259 = vmatprep.subr.mxu1 %v517_v32  ;;  %v513_v42 = vld [vmem:[%s2064_s3 + $0x40] sm:$0xff]  ;;  %v512_v45 = vld [vmem:[%s2064_s3 + $0x38] sm:$0xff]  ;;  %v511_v46 = vld [vmem:[%s2064_s3 + $0x30] sm:$0xff] }
  0x5f   : > { %1156 = vmatpush3.msra.mxu0 %v313_v16  ;;  %1260 = vmatpush3.msra.mxu1 %v517_v32  ;;  %v277_v47 = vld [vmem:[%s1791_s12 + $0x20] sm:$0xff]  ;;  %v280_v48 = vld [vmem:[%s1791_s12 + $0x38] sm:$0xff]  ;;  %v279_v49 = vld [vmem:[%s1791_s12 + $0x30] sm:$0xff] }
  0x60   : > { %1157 = vmatprep.subr.mxu0 %v328_v17  ;;  %1261 = vmatprep.subr.mxu1 %v516_v35  ;;  %v282_v50 = vld [vmem:[%s1791_s12 + $0x48] sm:$0xff]  ;;  %v281_v51 = vld [vmem:[%s1791_s12 + $0x40] sm:$0xff]  ;;  %v284_v52 = vld [vmem:[%s1791_s12 + $0x58] sm:$0xff] }
  0x61   : > { %1158 = vmatpush3.msra.mxu0 %v312_v18  ;;  %1262 = vmatpush3.msra.mxu1 %v516_v35  ;;  %v283_v53 = vld [vmem:[%s1791_s12 + $0x50] sm:$0xff]  ;;  %v286_v54 = vld [vmem:[%s1791_s12 + $0x68] sm:$0xff]  ;;  %v285_v55 = vld [vmem:[%s1791_s12 + $0x60] sm:$0xff] }
  0x62   : > { %1159 = vmatprep.subr.mxu0 %v327_v19  ;;  %1263 = vmatprep.subr.mxu1 %v515_v38  ;;  %v288_v56 = vld [vmem:[%s1791_s12 + $0x78] sm:$0xff]  ;;  %v287_v57 = vld [vmem:[%s1791_s12 + $0x70] sm:$0xff]  ;;  %v290_v58 = vld [vmem:[%s1791_s12 + $0x88] sm:$0xff] }
  0x63   : > { %1160 = vmatpush3.msra.mxu0 %v311_v20  ;;  %1264 = vmatpush3.msra.mxu1 %v515_v38  ;;  %v289_v59 = vld [vmem:[%s1791_s12 + $0x80] sm:$0xff]  ;;  %v292_v60 = vld [vmem:[%s1791_s12 + $0x98] sm:$0xff]  ;;  %v291_v61 = vld [vmem:[%s1791_s12 + $0x90] sm:$0xff] }
  0x64   : > { %1161 = vmatprep.subr.mxu0 %v326_v21  ;;  %1265 = vmatprep.subr.mxu1 %v514_v41  ;;  %v294_v62 = vld [vmem:[%s1791_s12 + $0xa8] sm:$0xff]  ;;  %v293_v63 = vld [vmem:[%s1791_s12 + $0xa0] sm:$0xff]  ;;  %v296_v0 = vld [vmem:[%s1791_s12 + $0xb8] sm:$0xff] }
  0x65   : > { %1162 = vmatpush3.msra.mxu0 %v310_v22  ;;  %1266 = vmatpush3.msra.mxu1 %v514_v41  ;;  %v295_v1 = vld [vmem:[%s1791_s12 + $0xb0] sm:$0xff]  ;;  %v298_v2 = vld [vmem:[%s1791_s12 + $0xc8] sm:$0xff]  ;;  %v297_v3 = vld [vmem:[%s1791_s12 + $0xc0] sm:$0xff] }
  0x66   : > { %1163 = vmatprep.subr.mxu0 %v325_v23  ;;  %1267 = vmatprep.subr.mxu1 %v513_v42  ;;  %v300_v4 = vld [vmem:[%s1791_s12 + $0xd8] sm:$0xff]  ;;  %v299_v5 = vld [vmem:[%s1791_s12 + $0xd0] sm:$0xff]  ;;  %v302_v6 = vld [vmem:[%s1791_s12 + $0xe8] sm:$0xff] }
  0x67   : > { %1164 = vmatpush3.msra.mxu0 %v309_v24  ;;  %1268 = vmatpush3.msra.mxu1 %v513_v42  ;;  %v301_v7 = vld [vmem:[%s1791_s12 + $0xe0] sm:$0xff]  ;;  %v304_v8 = vld [vmem:[%s1791_s12 + $0xf8] sm:$0xff]  ;;  %v303_v9 = vld [vmem:[%s1791_s12 + $0xf0] sm:$0xff] }
  0x68   : > { %1165 = vmatprep.subr.mxu0 %v324_v27  ;;  %1269 = vmatprep.subr.mxu1 %v512_v45  ;;  %v510_v10 = vld [vmem:[%s2064_s3 + $0x28] sm:$0xff]  ;;  %v509_v11 = vld [vmem:[%s2064_s3 + $0x20] sm:$0xff]  ;;  %v508_v12 = vld [vmem:[%s2064_s3 + $0x18] sm:$0xff] }
  0x69   : > { %1166 = vmatpush3.msra.mxu0 %v308_v28  ;;  %1270 = vmatpush3.msra.mxu1 %v512_v45  ;;  %v507_v13 = vld [vmem:[%s2064_s3 + $0x10] sm:$0xff]  ;;  %v506_v14 = vld [vmem:[%s2064_s3 + $0x8] sm:$0xff]  ;;  %v505_v15 = vld [vmem:[%s2064_s3] sm:$0xff] }
  0x6a   : > { %1167 = vmatprep.subr.mxu0 %v323_v30  ;;  %1271 = vmatprep.subr.mxu1 %v511_v46  ;;  %v1884_v18 = vld [vmem:[%s2063_s2] ss:$0 sm:$0xff] }
  0x6b   : > { %1168 = vmatpush3.msra.mxu0 %v307_v31  ;;  %1272 = vmatpush3.msra.mxu1 %v511_v46 }
  0x6c   : > { %1169 = vmatprep.subr.mxu0 %v322_v33  ;;  %1273 = vmatprep.subr.mxu1 %v510_v10 }
  0x6d   : > { %1170 = vmatpush3.msra.mxu0 %v306_v34  ;;  %1274 = vmatpush3.msra.mxu1 %v510_v10 }
  0x6e   : > { %1171 = vmatprep.subr.mxu0 %v321_v36  ;;  %1275 = vmatprep.subr.mxu1 %v509_v11 }
  0x6f   : > { %1172 = vmatpush3.msra.mxu0 %v305_v37  ;;  %1276 = vmatpush3.msra.mxu1 %v509_v11 }
  0x70   : > { %409 = vmatmul.mubr.f32.vlgmr.msra.gmra.mxu0 %v273_v39  ;;  %1277 = vmatprep.subr.mxu1 %v508_v12 }
  0x71   : > { %413 = vmatprep.mubr.f32.mxu0 %v276_v40  ;;  %1278 = vmatpush3.msra.mxu1 %v508_v12 }
  0x72   : > { %1279 = vmatprep.subr.mxu1 %v507_v13 }
  0x73   : > { %1280 = vmatpush3.msra.mxu1 %v507_v13 }
  0x74   : > { %414 = vmatmul.mubr.f32.gmra.mxu0 %v275_v43  ;;  %1281 = vmatprep.subr.mxu1 %v506_v14 }
  0x75   : > { %418 = vmatprep.mubr.f32.mxu0 %v278_v44  ;;  %1282 = vmatpush3.msra.mxu1 %v506_v14 }
  0x76   : > { %1283 = vmatprep.subr.mxu1 %v505_v15 }
  0x77   : > { %1284 = vmatpush3.msra.mxu1 %v505_v15 }
  0x78   : > { %419 = vmatmul.mubr.f32.gmra.mxu0 %v277_v47 }
  0x79   : > { %423 = vmatprep.mubr.f32.mxu0 %v280_v48 }
  0x7c   : > { %424 = vmatmul.mubr.f32.gmra.mxu0 %v279_v49 }
  0x7d   : > { %428 = vmatprep.mubr.f32.mxu0 %v282_v50 }
  0x80   : > { %429 = vmatmul.mubr.f32.gmra.mxu0 %v281_v51 }
  0x81   : > { %433 = vmatprep.mubr.f32.mxu0 %v284_v52 }
  0x84   : > { %434 = vmatmul.mubr.f32.gmra.mxu0 %v283_v53 }
  0x85   : > { %438 = vmatprep.mubr.f32.mxu0 %v286_v54 }
  0x88   : > { %439 = vmatmul.mubr.f32.gmra.mxu0 %v285_v55 }
  0x89   : > { %443 = vmatprep.mubr.f32.mxu0 %v288_v56 }
  0x8c   : > { %444 = vmatmul.mubr.f32.gmra.mxu0 %v287_v57 }
  0x8d   : > { %448 = vmatprep.mubr.f32.mxu0 %v290_v58 }
  0x90   : > { %449 = vmatmul.mubr.f32.gmra.mxu0 %v289_v59 }
  0x91   : > { %453 = vmatprep.mubr.f32.mxu0 %v292_v60 }
  0x94   : > { %454 = vmatmul.mubr.f32.gmra.mxu0 %v291_v61 }
  0x95   : > { %458 = vmatprep.mubr.f32.mxu0 %v294_v62 }
  0x98   : > { %459 = vmatmul.mubr.f32.gmra.mxu0 %v293_v63 }
  0x99   : > { %463 = vmatprep.mubr.f32.mxu0 %v296_v0 }
  0x9c   : > { %464 = vmatmul.mubr.f32.gmra.mxu0 %v295_v1 }
  0x9d   : > { %468 = vmatprep.mubr.f32.mxu0 %v298_v2 }
  0xa0   : > { %469 = vmatmul.mubr.f32.gmra.mxu0 %v297_v3 }
  0xa1   : > { %473 = vmatprep.mubr.f32.mxu0 %v300_v4 }
  0xa4   : > { %474 = vmatmul.mubr.f32.gmra.mxu0 %v299_v5 }
  0xa5   : > { %478 = vmatprep.mubr.f32.mxu0 %v302_v6 }
  0xa8   : > { %479 = vmatmul.mubr.f32.gmra.mxu0 %v301_v7 }
  0xa9   : > { %483 = vmatprep.mubr.f32.mxu0 %v304_v8 }
  0xac   : > { %484 = vmatmul.mubr.f32.gmra.mxu0 %v303_v9 }
 0x130   : > { %v1173_v16 = vpop.f32.mrf.mxu0 }
 0x132   : > { %v1174_v17 = vpop.f32.mrf.mxu0 }
 0x133   : > { %v1175_v19 = vadd.f32 %v1174_v17, %v1173_v16 }
 0x134   : > { %v1176_v20 = vpop.f32.mrf.mxu0 }
 0x135   : > { %v411_v21 = vadd.f32 %v1175_v19, %v1884_v18 }
 0x136   : > { %v1177_v22 = vpop.f32.mrf.mxu0 }
 0x137   : > { %v1178_v23 = vadd.f32 %v1177_v22, %v1176_v20  ;;  %v489_v24 = vmax.f32 %v411_v21, 0.0 }
 0x138   : > { %v1179_v25 = vpop.f32.mrf.mxu0 }
 0x139   : > { %v416_v26 = vadd.f32 %v1178_v23, %v1884_v18  ;;  %1285 = vmatprep.mubr.f32.mxu1 %v489_v24 }
 0x13a   : > { %v1180_v27 = vpop.f32.mrf.mxu0 }
 0x13b   : > { %v490_v28 = vmax.f32 %v416_v26, 0.0  ;;  %v1181_v29 = vadd.f32 %v1180_v27, %v1179_v25 }
 0x13c   : > { %v1182_v30 = vpop.f32.mrf.mxu0 }
 0x13d   : > { %v421_v31 = vadd.f32 %v1181_v29, %v1884_v18  ;;  %1286 = vmatmul.mubr.f32.vlgmr.msra.gmra.mxu1 %v490_v28 }
 0x13e   : > { %v1183_v32 = vpop.f32.mrf.mxu0 }
 0x13f   : > { %v491_v33 = vmax.f32 %v421_v31, 0.0  ;;  %v1184_v34 = vadd.f32 %v1183_v32, %v1182_v30 }
 0x140   : > { %v1185_v35 = vpop.f32.mrf.mxu0 }
 0x141   : > { %v426_v36 = vadd.f32 %v1184_v34, %v1884_v18  ;;  %1288 = vmatprep.mubr.f32.mxu1 %v491_v33  ;;  %v1905_v34 = vld [vmem:[%s2065_s4] ss:$0 sm:$0xff] }
 0x142   : > { %v1186_v37 = vpop.f32.mrf.mxu0 }
 0x143   : > { %v492_v38 = vmax.f32 %v426_v36, 0.0  ;;  %v1187_v39 = vadd.f32 %v1186_v37, %v1185_v35 }
 0x144   : > { %v1188_v40 = vpop.f32.mrf.mxu0 }
 0x145   : > { %v431_v41 = vadd.f32 %v1187_v39, %v1884_v18  ;;  %1289 = vmatmul.mubr.f32.gmra.mxu1 %v492_v38 }
 0x146   : > { %v1189_v42 = vpop.f32.mrf.mxu0 }
 0x147   : > { %v493_v43 = vmax.f32 %v431_v41, 0.0  ;;  %v1190_v44 = vadd.f32 %v1189_v42, %v1188_v40 }
 0x148   : > { %v1191_v45 = vpop.f32.mrf.mxu0 }
 0x149   : > { %v436_v46 = vadd.f32 %v1190_v44, %v1884_v18  ;;  %1291 = vmatprep.mubr.f32.mxu1 %v493_v43 }
 0x14a   : > { %v1192_v47 = vpop.f32.mrf.mxu0 }
 0x14b   : > { %v494_v48 = vmax.f32 %v436_v46, 0.0  ;;  %v1193_v49 = vadd.f32 %v1192_v47, %v1191_v45 }
 0x14c   : > { %v1194_v50 = vpop.f32.mrf.mxu0 }
 0x14d   : > { %v441_v51 = vadd.f32 %v1193_v49, %v1884_v18  ;;  %1292 = vmatmul.mubr.f32.gmra.mxu1 %v494_v48 }
 0x14e   : > { %v1195_v52 = vpop.f32.mrf.mxu0 }
 0x14f   : > { %v495_v53 = vmax.f32 %v441_v51, 0.0  ;;  %v1196_v54 = vadd.f32 %v1195_v52, %v1194_v50 }
 0x150   : > { %v1197_v55 = vpop.f32.mrf.mxu0 }
 0x151   : > { %v446_v56 = vadd.f32 %v1196_v54, %v1884_v18  ;;  %1294 = vmatprep.mubr.f32.mxu1 %v495_v53 }
 0x152   : > { %v1198_v57 = vpop.f32.mrf.mxu0 }
 0x153   : > { %v496_v58 = vmax.f32 %v446_v56, 0.0  ;;  %v1199_v59 = vadd.f32 %v1198_v57, %v1197_v55 }
 0x154   : > { %v1200_v60 = vpop.f32.mrf.mxu0 }
 0x155   : > { %v451_v61 = vadd.f32 %v1199_v59, %v1884_v18  ;;  %1295 = vmatmul.mubr.f32.gmra.mxu1 %v496_v58 }
 0x156   : > { %v1201_v62 = vpop.f32.mrf.mxu0 }
 0x157   : > { %v497_v63 = vmax.f32 %v451_v61, 0.0  ;;  %v1202_v0 = vadd.f32 %v1201_v62, %v1200_v60 }
 0x158   : > { %v1203_v1 = vpop.f32.mrf.mxu0 }
 0x159   : > { %v456_v2 = vadd.f32 %v1202_v0, %v1884_v18  ;;  %1297 = vmatprep.mubr.f32.mxu1 %v497_v63 }
 0x15a   : > { %v1204_v3 = vpop.f32.mrf.mxu0 }
 0x15b   : > { %v498_v4 = vmax.f32 %v456_v2, 0.0  ;;  %v1205_v5 = vadd.f32 %v1204_v3, %v1203_v1 }
 0x15c   : > { %v1206_v6 = vpop.f32.mrf.mxu0 }
 0x15d   : > { %v461_v7 = vadd.f32 %v1205_v5, %v1884_v18  ;;  %1298 = vmatmul.mubr.f32.gmra.mxu1 %v498_v4 }
 0x15e   : > { %v1207_v8 = vpop.f32.mrf.mxu0 }
 0x15f   : > { %v499_v9 = vmax.f32 %v461_v7, 0.0  ;;  %v1208_v10 = vadd.f32 %v1207_v8, %v1206_v6 }
 0x160   : > { %v1209_v11 = vpop.f32.mrf.mxu0 }
 0x161   : > { %v466_v12 = vadd.f32 %v1208_v10, %v1884_v18  ;;  %1300 = vmatprep.mubr.f32.mxu1 %v499_v9 }
 0x162   : > { %v1210_v13 = vpop.f32.mrf.mxu0 }
 0x163   : > { %v500_v14 = vmax.f32 %v466_v12, 0.0  ;;  %v1211_v15 = vadd.f32 %v1210_v13, %v1209_v11 }
 0x164   : > { %v1212_v16 = vpop.f32.mrf.mxu0 }
 0x165   : > { %v471_v17 = vadd.f32 %v1211_v15, %v1884_v18  ;;  %1301 = vmatmul.mubr.f32.gmra.mxu1 %v500_v14 }
 0x166   : > { %v1213_v19 = vpop.f32.mrf.mxu0 }
 0x167   : > { %v501_v20 = vmax.f32 %v471_v17, 0.0  ;;  %v1214_v21 = vadd.f32 %v1213_v19, %v1212_v16 }
 0x168   : > { %v1215_v22 = vpop.f32.mrf.mxu0 }
 0x169   : > { %v476_v23 = vadd.f32 %v1214_v21, %v1884_v18  ;;  %1303 = vmatprep.mubr.f32.mxu1 %v501_v20 }
 0x16a   : > { %v1216_v24 = vpop.f32.mrf.mxu0 }
 0x16b   : > { %v502_v25 = vmax.f32 %v476_v23, 0.0  ;;  %v1217_v26 = vadd.f32 %v1216_v24, %v1215_v22 }
 0x16c   : > { %v1218_v27 = vpop.f32.mrf.mxu0 }
 0x16d   : > { %v481_v28 = vadd.f32 %v1217_v26, %v1884_v18  ;;  %1304 = vmatmul.mubr.f32.gmra.mxu1 %v502_v25 }
 0x16e   : > { %v1219_v29 = vpop.f32.mrf.mxu0 }
 0x16f   : > { %v503_v30 = vmax.f32 %v481_v28, 0.0  ;;  %v1220_v31 = vadd.f32 %v1219_v29, %v1218_v27 }
 0x171   : > { %v486_v32 = vadd.f32 %v1220_v31, %v1884_v18  ;;  %1306 = vmatprep.mubr.f32.mxu1 %v503_v30 }
 0x173   : > { %v504_v33 = vmax.f32 %v486_v32, 0.0 }
 0x175   : > { %1307 = vmatmul.mubr.f32.gmra.mxu1 %v504_v33 }
 0x1fd   : > { %v1287_v35 = vpop.f32.mrf.mxu1 }
 0x1fe   : > { %v600_v36 = vadd.f32 %v1287_v35, %v1905_v34 }
 0x1ff   : > { %v594_v37 = vpop.f32.mrf.mxu1 }
 0x200   : > { %v1103_v38 = vmul.f32 -1.442695, %v600_v36  ;;  %v595_v39 = vadd.f32 %v1905_v34, %v594_v37 }
 0x202   : > { %1421 = vpow2.f32 %v1103_v38  ;;  %v1102_v40 = vmul.f32 -1.442695, %v595_v39 }
 0x204   : > { %1423 = vpow2.f32 %v1102_v40 }
 0x205   : > { %v1290_v41 = vpop.f32.mrf.mxu1 }
 0x206   : > { %v610_v18 = vadd.f32 %v1290_v41, %v1905_v34 }
 0x207   : > { %v604_v42 = vpop.f32.mrf.mxu1 }
 0x208   : > { %v1105_v43 = vmul.f32 -1.442695, %v610_v18  ;;  %v605_v44 = vadd.f32 %v1905_v34, %v604_v42 }
 0x20a   : > { %1425 = vpow2.f32 %v1105_v43  ;;  %v1104_v45 = vmul.f32 -1.442695, %v605_v44 }
 0x20c   : > { %1427 = vpow2.f32 %v1104_v45 }
 0x20d   : > { %v1293_v46 = vpop.f32.mrf.mxu1 }
 0x20e   : > { %v620_v47 = vadd.f32 %v1293_v46, %v1905_v34 }
 0x20f   : > { %v1422_v48 = vpop.eup %1421  ;;  %v614_v49 = vpop.f32.mrf.mxu1 }
 0x210   : > { %v722_v50 = vadd.f32 1.0, %v1422_v48  ;;  %v1107_v51 = vmul.f32 -1.442695, %v620_v47  ;;  %v615_v52 = vadd.f32 %v1905_v34, %v614_v49 }
 0x211   : > { %v1424_v53 = vpop.eup %1423 }
 0x212   : > { %1429 = vrcp.f32 %v722_v50  ;;  %v721_v54 = vadd.f32 1.0, %v1424_v53  ;;  %v1106_v55 = vmul.f32 -1.442695, %v615_v52 }
 0x213   : > { %1431 = vpow2.f32 %v1107_v51 }
 0x214   : > { %1433 = vrcp.f32 %v721_v54 }
 0x215   : > { %1435 = vpow2.f32 %v1106_v55  ;;  %v1296_v56 = vpop.f32.mrf.mxu1 }
 0x216   : > { %v630_v57 = vadd.f32 %v1296_v56, %v1905_v34 }
 0x217   : > { %v1426_v58 = vpop.eup %1425  ;;  %v624_v59 = vpop.f32.mrf.mxu1 }
 0x218   : > { %v724_v60 = vadd.f32 1.0, %v1426_v58  ;;  %v1109_v61 = vmul.f32 -1.442695, %v630_v57  ;;  %v625_v62 = vadd.f32 %v1905_v34, %v624_v59 }
 0x219   : > { %v1428_v63 = vpop.eup %1427 }
 0x21a   : > { %1437 = vrcp.f32 %v724_v60  ;;  %v723_v0 = vadd.f32 1.0, %v1428_v63  ;;  %v1108_v1 = vmul.f32 -1.442695, %v625_v62 }
 0x21b   : > { %1439 = vpow2.f32 %v1109_v61 }
 0x21c   : > { %1441 = vrcp.f32 %v723_v0 }
 0x21d   : > { %1443 = vpow2.f32 %v1108_v1  ;;  %v1299_v2 = vpop.f32.mrf.mxu1 }
 0x21e   : > { %v640_v3 = vadd.f32 %v1299_v2, %v1905_v34 }
 0x21f   : > { %v1430_v4 = vpop.eup %1429  ;;  %v634_v5 = vpop.f32.mrf.mxu1 }
 0x220   : > { %v1432_v6 = vpop.eup %1431  ;;  %771 = vst.msk [vmem:[%s1917_s17 + $0x8] sm:$0xff] %vm769_vm0, %v1430_v4  ;;  %v1111_v7 = vmul.f32 -1.442695, %v640_v3  ;;  %v635_v8 = vadd.f32 %v1905_v34, %v634_v5 }
 0x221   : > { %v1434_v9 = vpop.eup %1433  ;;  %v726_v10 = vadd.f32 1.0, %v1432_v6 }
 0x222   : > { %v1436_v11 = vpop.eup %1435  ;;  %770 = vst.msk [vmem:[%s1917_s17] sm:$0xff] %vm769_vm0, %v1434_v9  ;;  %1445 = vpow2.f32 %v1111_v7  ;;  %v1110_v12 = vmul.f32 -1.442695, %v635_v8 }
 0x223   : > { %1447 = vrcp.f32 %v726_v10  ;;  %v725_v13 = vadd.f32 1.0, %v1436_v11 }
 0x224   : > { %1449 = vpow2.f32 %v1110_v12 }
 0x225   : > { %1451 = vrcp.f32 %v725_v13  ;;  %v1302_v14 = vpop.f32.mrf.mxu1 }
 0x226   : > { %v650_v15 = vadd.f32 %v1302_v14, %v1905_v34 }
 0x227   : > { %v1438_v16 = vpop.eup %1437  ;;  %v644_v17 = vpop.f32.mrf.mxu1 }
 0x228   : > { %v1440_v19 = vpop.eup %1439  ;;  %773 = vst.msk [vmem:[%s1917_s17 + $0x18] sm:$0xff] %vm769_vm0, %v1438_v16  ;;  %v1113_v20 = vmul.f32 -1.442695, %v650_v15  ;;  %v645_v21 = vadd.f32 %v1905_v34, %v644_v17 }
 0x229   : > { %v1442_v22 = vpop.eup %1441  ;;  %v728_v23 = vadd.f32 1.0, %v1440_v19 }
 0x22a   : > { %v1444_v24 = vpop.eup %1443  ;;  %772 = vst.msk [vmem:[%s1917_s17 + $0x10] sm:$0xff] %vm769_vm0, %v1442_v22  ;;  %1453 = vpow2.f32 %v1113_v20  ;;  %v1112_v25 = vmul.f32 -1.442695, %v645_v21 }
 0x22b   : > { %1455 = vrcp.f32 %v728_v23  ;;  %v727_v26 = vadd.f32 1.0, %v1444_v24 }
 0x22c   : > { %1457 = vpow2.f32 %v1112_v25 }
 0x22d   : > { %1459 = vrcp.f32 %v727_v26  ;;  %v1305_v27 = vpop.f32.mrf.mxu1 }
 0x22e   : > { %v660_v28 = vadd.f32 %v1305_v27, %v1905_v34 }
 0x22f   : > { %v1446_v29 = vpop.eup %1445  ;;  %v654_v30 = vpop.f32.mrf.mxu1 }
 0x230   : > { %v1448_v31 = vpop.eup %1447  ;;  %v730_v32 = vadd.f32 1.0, %v1446_v29  ;;  %v1115_v33 = vmul.f32 -1.442695, %v660_v28  ;;  %v655_v35 = vadd.f32 %v1905_v34, %v654_v30 }
 0x231   : > { %v1450_v36 = vpop.eup %1449  ;;  %775 = vst.msk [vmem:[%s1917_s17 + $0x28] sm:$0xff] %vm769_vm0, %v1448_v31 }
 0x232   : > { %v1452_v37 = vpop.eup %1451  ;;  %1461 = vrcp.f32 %v730_v32  ;;  %v729_v38 = vadd.f32 1.0, %v1450_v36  ;;  %v1114_v39 = vmul.f32 -1.442695, %v655_v35 }
 0x233   : > { %774 = vst.msk [vmem:[%s1917_s17 + $0x20] sm:$0xff] %vm769_vm0, %v1452_v37  ;;  %1463 = vpow2.f32 %v1115_v33 }
 0x234   : > { %1465 = vrcp.f32 %v729_v38 }
 0x235   : > { %1467 = vpow2.f32 %v1114_v39  ;;  %v1308_v40 = vpop.f32.mrf.mxu1 }
 0x236   : > { %v670_v41 = vadd.f32 %v1308_v40, %v1905_v34 }
 0x237   : > { %v1454_v18 = vpop.eup %1453  ;;  %v664_v42 = vpop.f32.mrf.mxu1 }
 0x238   : > { %v1456_v43 = vpop.eup %1455  ;;  %v732_v44 = vadd.f32 1.0, %v1454_v18  ;;  %v1117_v45 = vmul.f32 -1.442695, %v670_v41  ;;  %v665_v46 = vadd.f32 %v1905_v34, %v664_v42 }
 0x239   : > { %v1458_v47 = vpop.eup %1457  ;;  %777 = vst.msk [vmem:[%s1917_s17 + $0x38] sm:$0xff] %vm769_vm0, %v1456_v43 }
 0x23a   : > { %v1460_v48 = vpop.eup %1459  ;;  %1469 = vrcp.f32 %v732_v44  ;;  %v731_v49 = vadd.f32 1.0, %v1458_v47  ;;  %v1116_v50 = vmul.f32 -1.442695, %v665_v46 }
 0x23b   : > { %776 = vst.msk [vmem:[%s1917_s17 + $0x30] sm:$0xff] %vm769_vm0, %v1460_v48  ;;  %1471 = vpow2.f32 %v1117_v45 }
 0x23c   : > { %1473 = vrcp.f32 %v731_v49 }
 0x23d   : > { %1475 = vpow2.f32 %v1116_v50 }
 0x23f   : > { %v1462_v51 = vpop.eup %1461 }
 0x240   : > { %v1464_v52 = vpop.eup %1463  ;;  %779 = vst.msk [vmem:[%s1917_s17 + $0x48] sm:$0xff] %vm769_vm0, %v1462_v51 }
 0x241   : > { %v1466_v34 = vpop.eup %1465  ;;  %v734_v53 = vadd.f32 1.0, %v1464_v52 }
 0x242   : > { %v1468_v54 = vpop.eup %1467  ;;  %778 = vst.msk [vmem:[%s1917_s17 + $0x40] sm:$0xff] %vm769_vm0, %v1466_v34 }
 0x243   : > { %1477 = vrcp.f32 %v734_v53  ;;  %v733_v55 = vadd.f32 1.0, %v1468_v54 }
 0x245   : > { %1479 = vrcp.f32 %v733_v55 }
 0x247   : > { %v1470_v56 = vpop.eup %1469 }
 0x248   : > { %v1472_v57 = vpop.eup %1471  ;;  %781 = vst.msk [vmem:[%s1917_s17 + $0x58] sm:$0xff] %vm769_vm0, %v1470_v56 }
 0x249   : > { %v1474_v58 = vpop.eup %1473  ;;  %v736_v59 = vadd.f32 1.0, %v1472_v57 }
 0x24a   : > { %v1476_v60 = vpop.eup %1475  ;;  %780 = vst.msk [vmem:[%s1917_s17 + $0x50] sm:$0xff] %vm769_vm0, %v1474_v58 }
 0x24b   : > { %1481 = vrcp.f32 %v736_v59  ;;  %v735_v61 = vadd.f32 1.0, %v1476_v60 }
 0x24d   : > { %1483 = vrcp.f32 %v735_v61 }
 0x250   : > { %v1478_v62 = vpop.eup %1477 }
 0x251   : > { %783 = vst.msk [vmem:[%s1917_s17 + $0x68] sm:$0xff] %vm769_vm0, %v1478_v62 }
 0x252   : > { %v1480_v63 = vpop.eup %1479 }
 0x253   : > { %782 = vst.msk [vmem:[%s1917_s17 + $0x60] sm:$0xff] %vm769_vm0, %v1480_v63 }
 0x257   : > { %792 = sbr.rel (!%p2073_p5) target bundleno = 645 (0x285), region = 52 }
 0x258   : > { %v1482_v0 = vpop.eup %1481 }
 0x259   : > { %785 = vst.msk [vmem:[%s1917_s17 + $0x78] sm:$0xff] %vm769_vm0, %v1482_v0 }
 0x25a   : > { %v1484_v1 = vpop.eup %1483 }
 0x25b   : > { %784 = vst.msk [vmem:[%s1917_s17 + $0x70] sm:$0xff] %vm769_vm0, %v1484_v1 }
 0x25c   : > { %s2084_s8 = smov (!%p795_p11, %s794_s8), 16 }
 0x25d   : > { %s1120_s14 = sshll.u32 %s2084_s8, 7 }
 0x25e   : > { %p1123_p4 = scmp.eq.s32.totalorder %s1120_s14, 0 }
 0x25f   : > { %s1971_s29 = sshrl.u32 (!%p1123_p4), %s2084_s8, 4 }
 0x260   : > { %803 = sbr.rel (%p1123_p4) target bundleno = 645 (0x285), region = 56  ;;  %p1124_p2 = scmp.le.s32.totalorder (!%p1123_p4), %s1971_s29, 0 }
 0x265   : > { %1027 = sbr.rel (%p1124_p2) target bundleno = 628 (0x274), region = 138  ;;  %s2074_s22 = smov (!%p1124_p2), %s1965_s13 }
 0x266   : > { %s2075_s12 = smov (!%p1124_p2), %s1917_s17  ;;  %s1980_s15 = smov (!%p1124_p2), 0  }
 0x267   : > { %s1982_s16 = smov (!%p1124_p2), 0  }
 0x26a LB: >> { %v896_v2 = vld [vmem:[%s1615_s12] sm:$0xff]  ;;  %v898_v3 = vld [vmem:[%s1615_s12 + $0x8] sm:$0xff]  ;;  %v900_v4 = vld [vmem:[%s1615_s12 + $0x10] sm:$0xff]  ;;  %s928_s18 = sadd.s32 1, %s1619_s15  ;;  %s890_s16 = sadd.s32 1, %s1623_s16   ;;  %s1623_s16 = sphi %s1982_s16, %s890_s16   ;;  %s1619_s15 = sphi %s1980_s15, %s2076_s15   ;;  %s1615_s12 = sphi %s2075_s12, %s933_s12   ;;  %s1611_s22 = sphi %s2074_s22, %s934_s22  }
 0x26b   : >> { %897 = vst [vmem:[%s1611_s22] sm:$0xff] %v896_v2  ;;  %899 = vst [vmem:[%s1611_s22 + $0x8] sm:$0xff] %v898_v3  ;;  %v902_v5 = vld [vmem:[%s1615_s12 + $0x18] sm:$0xff]  ;;  %v904_v6 = vld [vmem:[%s1615_s12 + $0x20] sm:$0xff]  ;;  %p929_p3 = scmp.ge.s32.totalorder %s928_s18, %s1971_s29  ;;  %p889_p1 = scmp.ge.s32.totalorder %s890_s16, %s1971_s29 }
 0x26c   : >> { %901 = vst [vmem:[%s1611_s22 + $0x10] sm:$0xff] %v900_v4  ;;  %v906_v7 = vld [vmem:[%s1615_s12 + $0x28] sm:$0xff]  ;;  %903 = vst [vmem:[%s1611_s22 + $0x18] sm:$0xff] %v902_v5  ;;  %v908_v8 = vld [vmem:[%s1615_s12 + $0x30] sm:$0xff] }
 0x26d   : >> { %905 = vst [vmem:[%s1611_s22 + $0x20] sm:$0xff] %v904_v6  ;;  %907 = vst [vmem:[%s1611_s22 + $0x28] sm:$0xff] %v906_v7  ;;  %v910_v9 = vld [vmem:[%s1615_s12 + $0x38] sm:$0xff]  ;;  %v912_v10 = vld [vmem:[%s1615_s12 + $0x40] sm:$0xff]  ;;  %s2086_s18 = smov (%p929_p3, %s928_s18), 0 }
 0x26e   : >> { %909 = vst [vmem:[%s1611_s22 + $0x30] sm:$0xff] %v908_v8  ;;  %911 = vst [vmem:[%s1611_s22 + $0x38] sm:$0xff] %v910_v9  ;;  %v914_v11 = vld [vmem:[%s1615_s12 + $0x48] sm:$0xff]  ;;  %v916_v12 = vld [vmem:[%s1615_s12 + $0x50] sm:$0xff]  ;;  %s1125_s25 = sshll.u32 %s2086_s18, 7  ;;  %s2076_s15 = smov %s2086_s18 }
 0x26f   : >> { %913 = vst [vmem:[%s1611_s22 + $0x40] sm:$0xff] %v912_v10  ;;  %v918_v13 = vld [vmem:[%s1615_s12 + $0x58] sm:$0xff]  ;;  %915 = vst [vmem:[%s1611_s22 + $0x48] sm:$0xff] %v914_v11  ;;  %v920_v14 = vld [vmem:[%s1615_s12 + $0x60] sm:$0xff]  ;;  %892 = sbr.rel (!%p889_p1) target bundleno = 618 (0x26a), region = 144 }
 0x270   : >> { %917 = vst [vmem:[%s1611_s22 + $0x50] sm:$0xff] %v916_v12  ;;  %919 = vst [vmem:[%s1611_s22 + $0x58] sm:$0xff] %v918_v13  ;;  %v922_v15 = vld [vmem:[%s1615_s12 + $0x68] sm:$0xff]  ;;  %v924_v16 = vld [vmem:[%s1615_s12 + $0x70] sm:$0xff] }
 0x271   : >> { %921 = vst [vmem:[%s1611_s22 + $0x60] sm:$0xff] %v920_v14  ;;  %923 = vst [vmem:[%s1611_s22 + $0x68] sm:$0xff] %v922_v15  ;;  %v926_v17 = vld [vmem:[%s1615_s12 + $0x78] sm:$0xff]  ;;  %s933_s12 = scalar_lea.vmem %s1917_s17, %s1125_s25 [#allocation6]  }
 0x272   : >> { %925 = vst [vmem:[%s1611_s22 + $0x70] sm:$0xff] %v924_v16  ;;  %927 = vst [vmem:[%s1611_s22 + $0x78] sm:$0xff] %v926_v17  ;;  %s934_s22 = scalar_lea.vmem %s1965_s13, %s1125_s25  }
 0x274 PF: > { %s2040_s27 = sand.u32 15, %s2084_s8   ;;  %s1139_s6 = sshll.u32 %s1971_s29, 7 }
 0x275   : > { %s939_s10 = scalar_lea.vmem %s1917_s17, %s1139_s6 [#allocation6]   ;;  %s941_s11 = scalar_lea.vmem %s1965_s13, %s1139_s6  }
 0x276   : > { %p1130_p6 = scmp.le.s32.totalorder %s2040_s27, 0 }
 0x277   : > { %s1625_s28 = smov (!%p1130_p6), %s941_s11   ;;  %s1629_s30 = smov (!%p1130_p6), %s939_s10  }
 0x278   : > { %1041 = sbr.rel (%p1130_p6) target bundleno = 645 (0x285), region = 149  ;;  %s1633_s7 = smov (!%p1130_p6), 0  }
 0x279   : > { %s1637_s24 = smov (!%p1130_p6), 0  }
 0x27d LB: >> { %v951_v19 = vld [vmem:[%s1631_s30] sm:$0xff]  ;;  %s953_s8 = sadd.s32 1, %s1635_s7  ;;  %s945_s24 = sadd.s32 1, %s1639_s24   ;;  %s1639_s24 = sphi %s1637_s24, %s945_s24   ;;  %s1635_s7 = sphi %s1633_s7, %s1634_s7   ;;  %s1631_s30 = sphi %s1629_s30, %s958_s30   ;;  %s1627_s28 = sphi %s1625_s28, %s959_s28  }
 0x27e   : >> { %952 = vst [vmem:[%s1627_s28] sm:$0xff] %v951_v19  ;;  %p954_p7 = scmp.ge.s32.totalorder %s953_s8, %s2040_s27  ;;  %p944_p9 = scmp.ge.s32.totalorder %s945_s24, %s2040_s27 }
 0x280   : >> { %s2088_s8 = smov (%p954_p7, %s953_s8), 0  ;;  %947 = sbr.rel (!%p944_p9) target bundleno = 637 (0x27d), region = 155 }
 0x281   : >> { %s1131_s17 = sshll.u32 %s2088_s8, 3  ;;  %s1634_s7 = smov %s2088_s8  }
 0x282   : >> { %s958_s30 = scalar_lea.vmem %s939_s10, %s1131_s17 [#allocation6]   ;;  %s959_s28 = scalar_lea.vmem %s941_s11, %s1131_s17  }
 0x285 PF: > { %p16_p8 = scmp.ge.s32.totalorder %s1699_s23, 5   ;;  %s2077_s18 = smov %s1599_s19 }
 0x286   : > { %s2078_s19 = smov %s1603_s20  ;;  %s2079_s20 = smov %s1709_s26 }
 0x287   : > { %s2080_s21 = smov %s1699_s23  ;;  %18 = sbr.rel (!%p16_p8) target bundleno = 4 (0x4), region = 166 }
 0x28c   :  { %975 = vsyncpa [#allocation3], 1 }
 0x28d   :  { %977 = vsyncpa [#allocation3 + $0x1], 1 }
 0x28e   :  { %978 = vsyncpa [#allocation5], 1 }

</bundles_post_ra>
